<compile_context>
chip_gen: v7x
topology: tpu7x:2x2x1
jax: 0.10.0
libtpu: 0.0.40
codegen_flags: <defaults>
</compile_context>

<pallas_src>
from typing import NamedTuple

import jax
import jax.numpy as jnp
from jax.experimental import pallas as pl
from jax.experimental.pallas import tpu as pltpu


class StructMat(NamedTuple):
    ii: jax.Array  # [P, P]
    ti: jax.Array  # [T, P]
    t: jax.Array   # [T]


# ----------------------------------------------------------------------------
# Pure-JAX reference sub-kernels (verification only in __main__).  The same
# math is hard-fused inside the Pallas kernel below.
# ----------------------------------------------------------------------------
def linear_kernel(G: StructMat) -> StructMat:
    return G


def exp_kernel(G: StructMat) -> StructMat:
    di = jnp.diag(G.ii)
    dt = G.t

    def k(K, dx, dy):
        r2 = jnp.maximum(dx[:, None] + dy[None, :] - 2.0 * K, 0.0)
        return jnp.exp(-jnp.sqrt(r2))

    return StructMat(k(G.ii, di, di), k(G.ti, dt, di), jnp.ones_like(dt))


def sqexp_kernel(G: StructMat) -> StructMat:
    di = jnp.diag(G.ii)
    dt = G.t

    def k(K, dx, dy):
        return jnp.exp(-0.5 * (dx[:, None] + dy[None, :] - 2.0 * K))

    return StructMat(k(G.ii, di, di), k(G.ti, dt, di), jnp.ones_like(dt))


# ----------------------------------------------------------------------------
# Small helpers.
# ----------------------------------------------------------------------------
def _round_up(x, m):
    return ((x + m - 1) // m) * m


def _round_down(x, m):
    return (x // m) * m


def _vmem_limit_bytes():
    """Generation-aware VMEM budget: ~48 MiB on v7x (64 MiB per TensorCore),
    ~96 MiB on v5e/v6e (128 MiB); conservative fallback if the query fails."""
    try:
        cap = int(pltpu.get_tpu_info().vmem_capacity_bytes)
    except Exception:  # pragma: no cover - older jax / query unavailable
        cap = 64 << 20
    return int(min(cap * 3 // 4, 96 << 20))


def _choose_tile(total, other_dim, itemsize, align, target_bytes):
    """Tile extent along the gridded axis of the dominant [rows, cols] field.

    Multiple of `align` (or the full extent, which is always legal), sized so
    one block is roughly `target_bytes` (amortizes the ~0.35us fixed per-step
    cost of the pipeline), and capped so the grid has >= 2 steps whenever
    `total` is large enough -- keeps both TensorCores busy on v7x under
    dimension_semantics=("parallel",).
    """
    if total <= 2 * align:
        return total
    tile = max(align, _round_down(target_bytes // (other_dim * itemsize), align))
    half = _round_up(-(-total // 2), align)      # ceil(total / 2), aligned
    tile = min(tile, half)
    return total if tile >= total else tile


# ----------------------------------------------------------------------------
# Fused Pallas kernel: softmax-weighted sum of the N=3 sub-kernels, one pass.
# ----------------------------------------------------------------------------
def _sum_ti_kernel(w_ref, g_ref, col_ref, row_ref, o_ref):
    """w_ref  : SMEM f32[3]     softmaxed mixture weights
       g_ref  : (rows, cols)    Gram tile (input dtype)
       col_ref: (rows, 1) f32   diagonal term broadcast over lanes
       row_ref: (1, cols) f32   diagonal term broadcast over sublanes
       o_ref  : (rows, cols)    weighted sum (out dtype)
    r2 = col + row - 2*g is the pairwise squared distance; exp/sqrt go to the
    EUP slot, so the kernel stays HBM-bandwidth bound."""
    w_lin, w_exp, w_se = w_ref[0], w_ref[1], w_ref[2]
    g = g_ref[...].astype(jnp.float32)
    r2 = jnp.maximum(col_ref[...] + row_ref[...] - 2.0 * g, 0.0)
    k_exp = jnp.exp(-jnp.sqrt(r2))   # Matern-1/2 / exponential
    k_se = jnp.exp(-0.5 * r2)        # squared-exponential
    o_ref[...] = (w_lin * g + w_exp * k_exp + w_se * k_se).astype(o_ref.dtype)


def _call_sum_ti(ws, g2d, col, row, *, tiled_axis, tile, out_dtype, vmem_limit):
    """One pallas_call over g2d [R, C], tiled along `tiled_axis` (0 or 1)."""
    R, C = g2d.shape
    if tiled_axis == 1:      # transposed layout [P, T]: test axis on lanes
        grid = (pl.cdiv(C, tile),)
        g_spec = pl.BlockSpec((R, tile), lambda i: (0, i))
        col_spec = pl.BlockSpec((R, 1), lambda i: (0, 0))
        row_spec = pl.BlockSpec((1, tile), lambda i: (0, i))
        o_spec = pl.BlockSpec((R, tile), lambda i: (0, i))
    else:                    # module layout [T, P] with lane-aligned P
        grid = (pl.cdiv(R, tile),)
        g_spec = pl.BlockSpec((tile, C), lambda i: (i, 0))
        col_spec = pl.BlockSpec((tile, 1), lambda i: (i, 0))
        row_spec = pl.BlockSpec((1, C), lambda i: (0, 0))
        o_spec = pl.BlockSpec((tile, C), lambda i: (i, 0))
    return pl.pallas_call(
        _sum_ti_kernel,
        grid=grid,
        in_specs=[
            pl.BlockSpec(memory_space=pltpu.MemorySpace.SMEM),  # mixture weights
            g_spec,
            col_spec,
            row_spec,
        ],
        out_specs=o_spec,
        out_shape=jax.ShapeDtypeStruct((R, C), out_dtype),
        compiler_params=pltpu.CompilerParams(
            dimension_semantics=("parallel",),   # shard T tiles over v7x's 2 TCs
            vmem_limit_bytes=vmem_limit,
        ),
    )(ws, g2d, col, row)


def _kii_and_kt(ws, gii, gt):
    # Tiny [P, P] and [T] pieces stay in plain JAX (XLA fuses them); a dedicated
    # pallas_call for a few-KiB block does not amortize its launch cost.
    gii = gii.astype(jnp.float32)
    di = jnp.diag(gii)
    r2 = jnp.maximum(di[:, None] + di[None, :] - 2.0 * gii, 0.0)
    kii = ws[0] * gii + ws[1] * jnp.exp(-jnp.sqrt(r2)) + ws[2] * jnp.exp(-0.5 * r2)
    kt = ws[0] * gt.astype(jnp.float32) + (ws[1] + ws[2])  # exp/sqexp diag == 1
    return di, kii, kt


# ----------------------------------------------------------------------------
# Wrappers (equivalent of SumKernel.forward(G)).
# ----------------------------------------------------------------------------
def sum_kernel_forward(weight_logits, G: StructMat, *, tile_bytes=2 << 20,
                       out_dtype=None) -> StructMat:
    """SumKernel.forward with the module-standard StructMat (ti is [T, P])."""
    ws = jax.nn.softmax(weight_logits.astype(jnp.float32), axis=0)
    out_dtype = G.ti.dtype if out_dtype is None else out_dtype
    T, P = G.ti.shape
    vmem_limit = _vmem_limit_bytes()
    target = min(int(tile_bytes), vmem_limit // 8)   # double-buffer headroom

    di, kii, kt = _kii_and_kt(ws, G.ii, G.t)

    if P % 128 == 0:
        # Inducing axis already lane-dense: tile T over sublanes, no padding,
        # no transpose; ragged T edge handled by the BlockSpec pipeline.
        tile_t = _choose_tile(T, P, 4, 8, target)
        kti = _call_sum_ti(ws, G.ti, G.t.astype(jnp.float32)[:, None],
                           di[None, :], tiled_axis=0, tile=tile_t,
                           out_dtype=out_dtype, vmem_limit=vmem_limit)
    else:
        # Small / lane-unaligned P: run lane-dense on the transposed [P, T]
        # layout (no 8x lane-padding traffic, full-width stores).
        # TODO(synk): to drop these two XLA transposes entirely, produce and
        # consume ti as [P, T] upstream and call sum_kernel_forward_it instead.
        tile_T = _choose_tile(T, P, 4, 128, target)
        kit = _call_sum_ti(ws, G.ti.T, di[:, None],
                           G.t.astype(jnp.float32)[None, :], tiled_axis=1,
                           tile=tile_T, out_dtype=out_dtype,
                           vmem_limit=vmem_limit)
        kti = kit.T
    return StructMat(kii.astype(out_dtype), kti, kt.astype(out_dtype))


def sum_kernel_forward_it(weight_logits, ii, it, t, *, tile_bytes=2 << 20,
                          out_dtype=None):
    """Kernel-native variant: the test x inducing block is stored transposed
    (it: [P, T], test axis on lanes).  Returns (Kii [P,P], Kit [P,T], Kt [T])
    with zero layout-plumbing passes."""
    ws = jax.nn.softmax(weight_logits.astype(jnp.float32), axis=0)
    out_dtype = it.dtype if out_dtype is None else out_dtype
    P, T = it.shape
    vmem_limit = _vmem_limit_bytes()
    target = min(int(tile_bytes), vmem_limit // 8)
    di, kii, kt = _kii_and_kt(ws, ii, t)
    tile_T = _choose_tile(T, P, 4, 128, target)
    kit = _call_sum_ti(ws, it, di[:, None], t.astype(jnp.float32)[None, :],
                       tiled_axis=1, tile=tile_T, out_dtype=out_dtype,
                       vmem_limit=vmem_limit)
    return kii.astype(out_dtype), kit, kt.astype(out_dtype)


if __name__ == "__main__":
    key = jax.random.PRNGKey(0)
    weight_logits = jnp.array([0.2, 0.3, 0.5], dtype=jnp.float32)
    ws = jax.nn.softmax(weight_logits, axis=0)

    def make_inputs(seed, T, P, D):
        k_i, k_t = jax.random.split(jax.random.fold_in(key, seed))
        Xi = jax.random.normal(k_i, (P, D), dtype=jnp.float32)
        Xt = jax.random.normal(k_t, (T, D), dtype=jnp.float32)
        G = StructMat(Xi @ Xi.T, Xt @ Xi.T, jnp.sum(Xt * Xt, -1))
        return G

    def reference(G):
        Ks = [k(G) for k in (linear_kernel, exp_kernel, sqexp_kernel)]
        return StructMat(
            sum(w * K.ii for w, K in zip(ws, Ks)),
            sum(w * K.ti for w, K in zip(ws, Ks)),
            sum(w * K.t for w, K in zip(ws, Ks)),
        )

    def check(out, ref):
        assert out.ii.shape == ref.ii.shape
        assert out.ti.shape == ref.ti.shape
        assert out.t.shape == ref.t.shape
        assert jnp.allclose(out.ii, ref.ii, atol=1e-4, rtol=1e-4)
        assert jnp.allclose(out.ti, ref.ti, atol=1e-4, rtol=1e-4)
        assert jnp.allclose(out.t, ref.t, atol=1e-4, rtol=1e-4)

    # Case 1: small, lane-unaligned inducing axis (P=16) -> transposed
    # lane-dense path; T=300 gives a 2-step "parallel" grid + ragged edge tile.
    G1 = make_inputs(1, T=300, P=16, D=8)
    out1 = sum_kernel_forward(weight_logits, G1)
    jax.block_until_ready(out1)
    ref1 = reference(G1)
    check(out1, ref1)

    # Kernel-native transposed entry point (ti stored as [P, T] end-to-end).
    kii_n, kit_n, kt_n = sum_kernel_forward_it(weight_logits, G1.ii, G1.ti.T, G1.t)
    jax.block_until_ready(kit_n)
    check(StructMat(kii_n, kit_n.T, kt_n), ref1)

    # Case 2: lane-aligned inducing axis (P=128) -> straight [T, P] path with a
    # ragged T edge and a 2-step parallel grid (no padding, no transpose).
    G2 = make_inputs(2, T=260, P=128, D=16)
    out2 = sum_kernel_forward(weight_logits, G2)
    jax.block_until_ready(out2)
    check(out2, reference(G2))

    print("KERNEL_OK")
</pallas_src>

<mosaic_0001>
module attributes {stable_mosaic.version = 11 : i64} {
  func.func @_sum_ti_kernel(%arg0: i32, %arg1: memref<3xf32, #tpu.memory_space<smem>>, %arg2: memref<16x256xf32, #tpu.memory_space<vmem>>, %arg3: memref<16x1xf32, #tpu.memory_space<vmem>>, %arg4: memref<1x256xf32, #tpu.memory_space<vmem>>, %arg5: memref<16x256xf32, #tpu.memory_space<vmem>>) attributes {dimension_semantics = [#tpu.dimension_semantics<parallel>], iteration_bounds = array<i64: 2>, scalar_prefetch = 0 : i64, scratch_operands = 0 : i64, tpu.core_type = #tpu.core_type<tc>, window_params = [{transform_indices = @transform_0, window_bounds = array<i64: 3>}, {transform_indices = @transform_1, window_bounds = array<i64: 16, 256>}, {pipeline_mode = #tpu.pipeline_mode<synchronous>, transform_indices = @transform_2, window_bounds = array<i64: 16, 1>}, {transform_indices = @transform_3, window_bounds = array<i64: 1, 256>}, {transform_indices = @transform_4, window_bounds = array<i64: 16, 256>}]} {
    %c0 = arith.constant 0 : index
    %0 = memref.load %arg1[%c0] : memref<3xf32, #tpu.memory_space<smem>>
    %c1 = arith.constant 1 : index
    %1 = memref.load %arg1[%c1] : memref<3xf32, #tpu.memory_space<smem>>
    %c2 = arith.constant 2 : index
    %2 = memref.load %arg1[%c2] : memref<3xf32, #tpu.memory_space<smem>>
    %c0_0 = arith.constant 0 : index
    %c0_1 = arith.constant 0 : index
    %3 = vector.load %arg2[%c0_0, %c0_1] : memref<16x256xf32, #tpu.memory_space<vmem>>, vector<16x256xf32>
    %c0_2 = arith.constant 0 : index
    %c0_3 = arith.constant 0 : index
    %4 = vector.load %arg3[%c0_2, %c0_3] : memref<16x1xf32, #tpu.memory_space<vmem>>, vector<16x1xf32>
    %c0_4 = arith.constant 0 : index
    %c0_5 = arith.constant 0 : index
    %5 = vector.load %arg4[%c0_4, %c0_5] : memref<1x256xf32, #tpu.memory_space<vmem>>, vector<1x256xf32>
    %6 = vector.broadcast %4 : vector<16x1xf32> to vector<16x256xf32>
    %7 = vector.broadcast %5 : vector<1x256xf32> to vector<16x256xf32>
    %8 = arith.addf %6, %7 : vector<16x256xf32>
    %cst = arith.constant 2.000000e+00 : f32
    %9 = vector.broadcast %cst : f32 to vector<16x256xf32>
    %10 = arith.mulf %9, %3 : vector<16x256xf32>
    %11 = arith.subf %8, %10 : vector<16x256xf32>
    %cst_6 = arith.constant 0.000000e+00 : f32
    %12 = vector.broadcast %cst_6 : f32 to vector<16x256xf32>
    %13 = arith.maximumf %11, %12 : vector<16x256xf32>
    %14 = math.sqrt %13 : vector<16x256xf32>
    %cst_7 = arith.constant 0.000000e+00 : f32
    %15 = vector.broadcast %cst_7 : f32 to vector<16x256xf32>
    %16 = arith.subf %15, %14 : vector<16x256xf32>
    %17 = math.exp %16 : vector<16x256xf32>
    %cst_8 = arith.constant -5.000000e-01 : f32
    %18 = vector.broadcast %cst_8 : f32 to vector<16x256xf32>
    %19 = arith.mulf %18, %13 : vector<16x256xf32>
    %20 = math.exp %19 : vector<16x256xf32>
    %21 = vector.broadcast %0 : f32 to vector<16x256xf32>
    %22 = arith.mulf %21, %3 : vector<16x256xf32>
    %23 = vector.broadcast %1 : f32 to vector<16x256xf32>
    %24 = arith.mulf %23, %17 : vector<16x256xf32>
    %25 = arith.addf %22, %24 : vector<16x256xf32>
    %26 = vector.broadcast %2 : f32 to vector<16x256xf32>
    %27 = arith.mulf %26, %20 : vector<16x256xf32>
    %28 = arith.addf %25, %27 : vector<16x256xf32>
    %c0_9 = arith.constant 0 : index
    %c0_10 = arith.constant 0 : index
    %29 = vector.load %arg5[%c0_9, %c0_10] : memref<16x256xf32, #tpu.memory_space<vmem>>, vector<16x256xf32>
    tpu.vector_store %arg5[%c0_9, %c0_10], %28 {strides = array<i32>} : memref<16x256xf32, #tpu.memory_space<vmem>>, vector<16x256xf32>,
    return
  }
  func.func @transform_0(%arg0: i32) -> i32 {
    %c0_i32 = arith.constant 0 : i32
    %c0_i32_0 = arith.constant 0 : i32
    return %c0_i32 : i32
  }
  func.func @transform_1(%arg0: i32) -> (i32, i32) {
    %c0_i32 = arith.constant 0 : i32
    %c0_i32_0 = arith.constant 0 : i32
    return %c0_i32, %arg0 : i32, i32
  }
  func.func @transform_2(%arg0: i32) -> (i32, i32) {
    %c0_i32 = arith.constant 0 : i32
    %c0_i32_0 = arith.constant 0 : i32
    %c0_i32_1 = arith.constant 0 : i32
    return %c0_i32, %c0_i32_0 : i32, i32
  }
  func.func @transform_3(%arg0: i32) -> (i32, i32) {
    %c0_i32 = arith.constant 0 : i32
    %c0_i32_0 = arith.constant 0 : i32
    return %c0_i32, %arg0 : i32, i32
  }
  func.func @transform_4(%arg0: i32) -> (i32, i32) {
    %c0_i32 = arith.constant 0 : i32
    %c0_i32_0 = arith.constant 0 : i32
    return %c0_i32, %arg0 : i32, i32
  }
}

</mosaic_0001>

<bundles_post_ra>
// kernel: tpu_custom_call.1
= control target key start
LH: loop header
LB: loop body
LE: loop exit
PB: predicated region body
PF: predicated region fallthrough
CT: control target
= control target key end

     0   :  { %9 = vsyncpa [#allocation5], 0  ;;  %s1038_s0 = inlined_call_operand.vmem [shape: f32[3], index: 0, kind: input, shape index: {}]   ;;  %s1039_s1 = inlined_call_operand.hbm [shape: f32[16,300], index: 1, kind: input, shape index: {}]   ;;  %s1040_s2 = inlined_call_operand.vmem [shape: f32[16,1], index: 2, kind: input, shape index: {}]   ;;  %s1041_s3 = inlined_call_operand.vmem [shape: f32[1,300], index: 3, kind: input, shape index: {}]   ;;  %s1042_s4 = inlined_call_operand.hbm [shape: f32[16,300], index: 4, kind: output, shape index: {}]  }
   0x1   :  { %10 = vsyncpa [#allocation3], 0 }
   0x2   :  { %12 = vsyncpa [#allocation3 + $0x1], 0 }
   0x3   :  { %13 = vsyncpa [#allocation4], 0 }
   0x4   :  { %15 = vsyncpa [#allocation4 + $0x1], 0  ;;  %s790_s15 = smov 0   ;;  %s792_s16 = smov 0  }
   0x5   :  { %s794_s17 = smov 0   ;;  %s796_s18 = smov 0  }
   0x6 LB: > { %s811_s19 = sadd.s32 4294967295, %s755_s18   ;;  %s527_s20 = sadd.s32 4294967294, %s755_s18   ;;  %s755_s18 = sphi %s796_s18, %s1057_s18   ;;  %s751_s17 = sphi %s794_s17, %s1056_s17   ;;  %s747_s16 = sphi %s792_s16, %s1055_s16   ;;  %s743_s15 = sphi %s790_s15, %s1054_s15  }
   0x7   : > { %s815_s21 = sadd.s32 1, %s755_s18   ;;  %s49_s22 = sadd.s32 1, %s751_s17 }
   0x8   : > { %s46_s23 = ssub.s32 %s755_s18, %s815_s21  ;;  %p56_p0 = scmp.ne.s32.totalorder %s751_s17, %s747_s16 }
   0x9   : > { %p47_p1 = scmp.eq.s32.totalorder %s46_s23, 0  ;;  %p57_p2 = scmp.eq.s32.totalorder %s755_s18, 0 }
   0xa   : > { %p62_p3 = scmp.ne.s32.totalorder %s747_s16, %s743_s15  ;;  %p63_p4 = scmp.eq.s32.totalorder %s811_s19, 0 }
   0xb   : > { %s827_s24 = scalar_select %p47_p1, %s751_s17, %s49_s22  }
   0xc   : > { %p829_p5 = por %p57_p2, %p56_p0  ;;  %p835_p6 = por %p63_p4, %p62_p3 }
   0xd   : > { %p133_p7 = scmp.eq.s32.totalorder %s811_s19, 1  ;;  %p139_p8 = scmp.eq.s32.totalorder %s527_s20, 1 }
   0xe   : > { %s1046_s26 = scalar_select %p835_p6, 1, 0 }
   0xf   : > { %p528_p9 = scmp.ge.s32.totalorder %s755_s18, 1  ;;  %p146_p10 = scmp.lt.s32.totalorder %s755_s18, 3 }
  0x10   : > { %p842_p11 = por %p133_p7, %p56_p0  ;;  %p846_p12 = por %p139_p8, %p62_p3 }
  0x11   : > { %p850_p13 = pnand %p528_p9, %p146_p10  ;;  %s159_s6 = sshll.u32 %s1038_s0, 4  ;;  %s160_s6 = int_to_ptr.vmem [resolvable:$true] %s159_s6 }
  0x12   : > { %s1047_s27 = scalar_select %p842_p11, 1, 0 }
  0x13   : > { %s1048_s28 = scalar_select %p846_p12, 1, 0 }
  0x14   : > { %p568_p1 = pneg %p850_p13  ;;  %s642_s7 = scalar_lea.vmem %s160_s6, 16 }
  0x15   : > { %p643_p2 = scmp.ne.s32.totalorder %s160_s6, %s642_s7  ;;  %p650_p12 = scmp.lt.s32.totalorder %s160_s6, %s160_s6 }
  0x16   : > { %p569_p0 = pnand %p568_p1, %p63_p4  ;;  %p651_p9 = scmp.lt.s32.totalorder %s642_s7, %s642_s7 }
  0x18   : > { %p644_p3 = pneg %p569_p0  ;;  %p652_p10 = por %p651_p9, %p650_p12 }
  0x1a   : > { %p645_p7 = pnand %p644_p3, %p643_p2 }
  0x1c   : > { %p646_p8 = pneg %p645_p7 }
  0x1e   : > { %p653_p11 = pnand %p652_p10, %p646_p8 }
  0x20   : > { %656 = shalt.err (!%p653_p11)
}
  0x21   : > { %s757_s8 = smov [#allocation2]   ;;  %p1044_p6 = scmp.ge.s32.totalorder %s755_s18, 2 }
  0x22   : > { %571 = dma.vmem_to_smem (!%p569_p0), %s160_s6, 16, %s757_s8, [#allocation5]  }
  0x23   : > { %169 = sbr.rel (%p1044_p6) target bundleno = 77 (0x4d), region = 24 }
  0x2a   : > { %172 = sbr.rel (!%p829_p5) target bundleno = 77 (0x4d), region = 28  ;;  %s173_s9 = sand.u32 (%p829_p5), 1, %s751_s17  }
  0x2b   : > { %s532_s10 = sshll.u32 (%p829_p5), %s755_s18, 1  ;;  %s531_s11 = sshll.u32 (%p829_p5), %s173_s9, 5 }
  0x2c   : > { %s179_s12 = ssub.s32 (%p829_p5), 3, %s532_s10  ;;  %s874_s20 = scalar_lea.sflag (%p829_p5), [#allocation3], %s173_s9 }
  0x2d   : > { %p180_p1 = scmp.lt.s32.totalorder (%p829_p5), %s179_s12, 2  ;;  %s177_s22 = scalar_lea.vmem (%p829_p5), [#allocation6], %s531_s11 }
  0x31   : > { %s1059_s12 = smov (!%p180_p1, %s179_s12), 2 }
  0x32   : > { %s871_s13 = sshll.u32 %s1059_s12, 8 }
  0x33   : > { %s184_s14 = ssub.s32 512, %s871_s13 }
  0x34   : > { %185 = vsyncadd %s874_s20, %s184_s14  ;;  %p534_p5 = scmp.ne.s32.totalorder %s871_s13, 0  ;;  %s556_s23 = sshll.u32 %s755_s18, 8 }
  0x35   : > { %s882_s5 = scalar_lea.hbm %s1039_s1, %s556_s23  ;;  %s536_s6 = sshll.u32 %s1059_s12, 3 }
  0x36   : > { %s191_s7 = sshll.u32 %s177_s22, 4  ;;  %s657_s8 = scalar_lea.hbm %s882_s5, %s871_s13  ;;  %s885_s7 = int_to_ptr.vmem [resolvable:$true] %s191_s7 }
  0x37   : > { %p658_p11 = scmp.ne.s32.totalorder %s882_s5, %s657_s8  ;;  %s661_s11 = scalar_lea.hbm %s1039_s1, 768 }
  0x38   : > { %p662_p2 = scmp.lt.u32.totalorder %s882_s5, %s1039_s1  ;;  %p663_p3 = scmp.lt.u32.totalorder %s661_s11, %s657_s8 }
  0x39   : > { %p659_p12 = pnand %p658_p11, %p534_p5  ;;  %p665_p8 = scmp.lt.u32.totalorder %s657_s8, %s882_s5 }
  0x3a   : > { %p664_p7 = por %p663_p3, %p662_p2 }
  0x3b   : > { %p660_p0 = pneg %p659_p12 }
  0x3c   : > { %p666_p9 = por %p665_p8, %p664_p7 }
  0x3e   : > { %p667_p10 = pnand %p666_p9, %p660_p0 }
  0x40   : > { %670 = shalt.err (!%p667_p10)
}
  0x41   : > { %s671_s22 = scalar_lea.vmem %s885_s7, %s871_s13  ;;  %s758_s25 = smov [#allocation6]  }
  0x42   : > { %p672_p1 = scmp.ne.s32.totalorder %s885_s7, %s671_s22  ;;  %s675_s30 = sshll.u32 %s758_s25, 4  ;;  %s676_s30 = int_to_ptr.vmem [resolvable:$false] %s675_s30 }
  0x43   : > { %s677_s9 = scalar_lea.vmem %s676_s30, 1024  ;;  %p678_p6 = scmp.lt.s32.totalorder %s885_s7, %s676_s30 }
  0x44   : > { %p673_p11 = pnand %p672_p1, %p534_p5  ;;  %p679_p2 = scmp.lt.s32.totalorder %s677_s9, %s671_s22 }
  0x46   : > { %p674_p12 = pneg %p673_p11  ;;  %p680_p3 = por %p679_p2, %p678_p6 }
  0x48   : > { %p681_p7 = pnand %p680_p3, %p674_p12 }
  0x4a   : > { %684 = shalt.err (!%p681_p7)
}
  0x4b   : > { %s759_s8 = smov 384   ;;  %s760_s10 = smov 256  }
  0x4c   : > { %197 = dma.hbm_to_vmem [thread:$0]  (%p534_p5), %s882_s5, %s871_s13, %s885_s7, %s874_s20, %s759_s8, %s760_s10, %s536_s6  }
  0x4d PF: > { %219 = sbr.rel (%p850_p13) target bundleno = 298 (0x12a), region = 36 }
  0x54   : > { %730 = dma.done.wait (%p63_p4), [#allocation5], 16  }
  0x55   : > { %732 = vsyncadd (%p63_p4), [#allocation5], 4294967280  ;;  %s921_s11 = sand.u32 1, %s747_s16   ;;  %p1050_p6 = scmp.ne.s32.totalorder %s1046_s26, 0 }
  0x56   : > { %s541_s12 = sshll.u32 %s921_s11, 5  ;;  %s226_s13 = scalar_lea.sflag [#allocation3], %s921_s11 }
  0x57   : > { %s229_s20 = scalar_lea.vmem [#allocation6], %s541_s12 }
  0x58   : > { %734 = dma.done.wait (%p1050_p6), %s226_s13, 512  }
  0x59   : > { %736 = vsyncadd (%p1050_p6), %s226_s13, 4294966784 }
  0x5a   : > { %234 = sfence }
  0x5b   : > { %v293_v0 = vld [vmem:[%s1040_s2] sm:$0xff]  ;;  %v761_v1 = vmov 0   ;;  %v294_v2 = vld [vmem:[%s1040_s2 + $0x8] sm:$0xff]  ;;  %s938_s14 = sshll.u32 %s811_s19, 1  ;;  %v307_v3 = vlaneseq  ;;  %v951_v17 = vld [vmem:[%s229_s20 + $0x10] sm:$0xff]  ;;  %s286_s30 = sld [smem:[#allocation2]] }
  0x5c   : > { %617 = vset.pattern.permute.xlu0 %v761_v1  ;;  %p273_p4 = scmp.lt.s32.totalorder %s938_s14, 2  ;;  %v945_v8 = vld [vmem:[%s229_s20] sm:$0xff]  ;;  %v947_v9 = vld [vmem:[%s229_s20 + $0x8] sm:$0xff]  ;;  %v953_v18 = vld [vmem:[%s229_s20 + $0x18] sm:$0xff]  ;;  %v323_v22 = vmul.f32 2.0, %v951_v17  ;;  %s544_s9 = sld [smem:[#allocation2 + $0x1]] }
  0x5d   : > { %298 = vperm.xlu0 %617, %v293_v0   ;;  %v308_v4 = vshrl.u32 %v307_v3, 7  ;;  %v321_v12 = vmul.f32 2.0, %v945_v8  ;;  %v322_v13 = vmul.f32 2.0, %v947_v9  ;;  %v324_v23 = vmul.f32 2.0, %v953_v18  ;;  %s545_s8 = sld [smem:[#allocation2 + $0x2]]  ;;  %s961_s10 = scalar_lea.vmem [#allocation7], %s541_s12 }
  0x5e   : > { %s274_s26 = scalar_select %p273_p4, %s938_s14, 2 }
  0x5f   : > { %v309_v5 = vsub.s32 0, %v308_v4  ;;  %v313_v6 = vsub.s32 1, %v308_v4  ;;  %s413_s12 = scalar_lea.sflag [#allocation4], %s921_s11  ;;  %p1051_p13 = scmp.ne.s32.totalorder %s1047_s27, 0 }
  0x60   : > { %s275_s25 = scalar_lea.vmem %s1041_s3, %s274_s26  ;;  %s421_s13 = ssub.s32 (%p1051_p13), 3, %s938_s14 }
  0x61   : > { %303 = vperm.xlu0 %617, %v294_v2   ;;  %v295_v7 = vld [vmem:[%s275_s25] sm:$0x3]  ;;  %v385_v2 = vstv %s286_s30  ;;  %p422_p5 = scmp.lt.s32.totalorder (%p1051_p13), %s421_s13, 2 }
  0x62   : > { %v310_v10 = vrot.slane %v295_v7, %v309_v5  ;;  %v314_v11 = vrot.slane %v295_v7, %v313_v6  ;;  %v390_v6 = vstv %s544_s9 }
  0xdc   : > { %v299_v14 = vpop.permute.xlu0 %298 }
  0xdd   : > { %v317_v15 = vadd.f32 %v310_v10, %v299_v14  ;;  %v318_v16 = vadd.f32 %v314_v11, %v299_v14 }
  0xdf   : > { %v325_v19 = vsub.f32 %v317_v15, %v321_v12  ;;  %v326_v20 = vsub.f32 %v318_v16, %v322_v13  ;;  %v387_v12 = vmul.f32 %v385_v2, %v947_v9  ;;  %v399_v13 = vstv %s545_s8 }
  0xe0   : > { %v304_v21 = vpop.permute.xlu0 %303 }
  0xe1   : > { %v329_v24 = vmax.f32 %v325_v19, 0.0  ;;  %v330_v25 = vmax.f32 %v326_v20, 0.0  ;;  %v319_v26 = vadd.f32 %v310_v10, %v304_v21  ;;  %v320_v27 = vadd.f32 %v314_v11, %v304_v21 }
  0xe2   : > { %v386_v10 = vmul.f32 %v385_v2, %v945_v8  ;;  %v388_v8 = vmul.f32 %v385_v2, %v951_v17 }
  0xe3   : > { %618 = vrsqrt.f32 %v329_v24  ;;  %v327_v28 = vsub.f32 %v319_v26, %v323_v22  ;;  %v328_v29 = vsub.f32 %v320_v27, %v324_v23  ;;  %v373_v32 = vmul.f32 -0.5, %v329_v24 }
  0xe4   : > { %620 = vrsqrt.f32 %v330_v25  ;;  %v374_v34 = vmul.f32 -0.5, %v330_v25  ;;  %vm335_vm0 = vcmp.eq.f32.partialorder %v329_v24, inf  ;;  %vm337_vm1 = vcmp.eq.f32.partialorder %v329_v24, 0.0 }
  0xe5   : > { %v331_v30 = vmax.f32 %v327_v28, 0.0  ;;  %v332_v31 = vmax.f32 %v328_v29, 0.0  ;;  %v338_v37 = vand.u32 2147483648, %v329_v24  ;;  %vm342_vm2 = vcmp.eq.f32.partialorder %v330_v25, inf }
  0xe6   : > { %v345_v40 = vand.u32 2147483648, %v330_v25  ;;  %v377_v41 = vmul.f32 1.442695, %v373_v32  ;;  %vm344_vm3 = vcmp.eq.f32.partialorder %v330_v25, 0.0  ;;  %v379_v44 = vmul.f32 1.442695, %v374_v34 }
  0xe7   : > { %622 = vrsqrt.f32 %v331_v30  ;;  %v375_v49 = vmul.f32 -0.5, %v331_v30  ;;  %v376_v52 = vmul.f32 -0.5, %v332_v31  ;;  %vm349_vm4 = vcmp.eq.f32.partialorder %v331_v30, inf }
  0xe8   : > { %624 = vrsqrt.f32 %v332_v31  ;;  %vm351_vm5 = vcmp.eq.f32.partialorder %v331_v30, 0.0  ;;  %v352_v55 = vand.u32 2147483648, %v331_v30  ;;  %vm356_vm6 = vcmp.eq.f32.partialorder %v332_v31, inf }
  0xe9   : > { %626 = vpow2.f32 %v377_v41  ;;  %v359_v58 = vand.u32 2147483648, %v332_v31  ;;  %v381_v59 = vmul.f32 1.442695, %v375_v49  ;;  %vm358_vm7 = vcmp.eq.f32.partialorder %v332_v31, 0.0 }
  0xea   : > { %628 = vpow2.f32 %v379_v44  ;;  %v383_v62 = vmul.f32 1.442695, %v376_v52  ;;  %v389_v27 = vmul.f32 %v385_v2, %v953_v18 }
  0xed   : > { %v619_v33 = vpop.eup %618 }
  0xee   : > { %v621_v35 = vpop.eup %620  ;;  %v334_v36 = vmul.f32 %v619_v33, %v329_v24 }
  0xef   : > { %v341_v38 = vmul.f32 %v621_v35, %v330_v25 }
  0xf0   : > { %v336_v39 = vsel %vm335_vm0, %v329_v24, %v334_v36 }
  0xf1   : > { %v339_v42 = vsel %vm337_vm1, %v338_v37, %v336_v39  ;;  %v343_v43 = vsel %vm342_vm2, %v330_v25, %v341_v38  ;;  %v623_v50 = vpop.eup %622 }
  0xf2   : > { %v346_v45 = vsel %vm344_vm3, %v345_v40, %v343_v43  ;;  %v361_v46 = vsub.f32 0.0, %v339_v42  ;;  %v625_v53 = vpop.eup %624  ;;  %v348_v54 = vmul.f32 %v623_v50, %v331_v30 }
  0xf3   : > { %v362_v47 = vsub.f32 0.0, %v346_v45  ;;  %v355_v56 = vmul.f32 %v625_v53, %v332_v31  ;;  %v627_v5 = vpop.eup %626 }
  0xf4   : > { %v365_v48 = vmul.f32 1.442695, %v361_v46  ;;  %v350_v57 = vsel %vm349_vm4, %v331_v30, %v348_v54  ;;  %v629_v7 = vpop.eup %628  ;;  %v400_v20 = vmul.f32 %v627_v5, %v399_v13 }
  0xf5   : > { %v367_v51 = vmul.f32 1.442695, %v362_v47  ;;  %v353_v60 = vsel %vm351_vm5, %v352_v55, %v350_v57  ;;  %v357_v61 = vsel %vm356_vm6, %v332_v31, %v355_v56  ;;  %v401_v22 = vmul.f32 %v629_v7, %v399_v13 }
  0xf6   : > { %630 = vpow2.f32 %v365_v48  ;;  %v360_v63 = vsel %vm358_vm7, %v359_v58, %v357_v61  ;;  %v363_v0 = vsub.f32 0.0, %v353_v60 }
  0xf7   : > { %632 = vpow2.f32 %v367_v51  ;;  %v364_v1 = vsub.f32 0.0, %v360_v63 }
  0xf8   : > { %v369_v3 = vmul.f32 1.442695, %v363_v0  ;;  %634 = vpow2.f32 %v381_v59 }
  0xf9   : > { %v371_v4 = vmul.f32 1.442695, %v364_v1  ;;  %636 = vpow2.f32 %v383_v62 }
  0xfa   : > { %638 = vpow2.f32 %v369_v3 }
  0xfb   : > { %640 = vpow2.f32 %v371_v4 }
 0x100   : > { %v631_v11 = vpop.eup %630 }
 0x101   : > { %v633_v14 = vpop.eup %632  ;;  %v391_v15 = vmul.f32 %v631_v11, %v390_v6 }
 0x102   : > { %v392_v16 = vmul.f32 %v633_v14, %v390_v6  ;;  %v635_v24 = vpop.eup %634 }
 0x103   : > { %v395_v19 = vadd.f32 %v391_v15, %v386_v10  ;;  %v637_v26 = vpop.eup %636  ;;  %v402_v32 = vmul.f32 %v635_v24, %v399_v13 }
 0x104   : > { %v396_v21 = vadd.f32 %v392_v16, %v387_v12  ;;  %v639_v9 = vpop.eup %638  ;;  %v403_v34 = vmul.f32 %v637_v26, %v399_v13 }
 0x105   : > { %v404_v23 = vadd.f32 %v400_v20, %v395_v19  ;;  %v641_v28 = vpop.eup %640  ;;  %v393_v29 = vmul.f32 %v639_v9, %v390_v6 }
 0x106   : > { %v405_v25 = vadd.f32 %v401_v22, %v396_v21  ;;  %v394_v30 = vmul.f32 %v641_v28, %v390_v6  ;;  %419 = sbr.rel (!%p1051_p13) target bundleno = 298 (0x12a), region = 48 }
 0x107   : > { %408 = vst [vmem:[%s961_s10] sm:$0xff] %v404_v23  ;;  %v397_v31 = vadd.f32 %v393_v29, %v388_v8 }
 0x108   : > { %409 = vst [vmem:[%s961_s10 + $0x8] sm:$0xff] %v405_v25  ;;  %v398_v33 = vadd.f32 %v394_v30, %v389_v27 }
 0x109   : > { %v406_v35 = vadd.f32 %v402_v32, %v397_v31 }
 0x10a   : > { %v407_v36 = vadd.f32 %v403_v34, %v398_v33 }
 0x10b   : > { %410 = vst [vmem:[%s961_s10 + $0x10] sm:$0xff] %v406_v35 }
 0x10c   : > { %411 = vst [vmem:[%s961_s10 + $0x18] sm:$0xff] %v407_v36 }
 0x10d   : > { %s1061_s13 = smov (!%p422_p5, %s421_s13), 2 }
 0x10e   : > { %s976_s20 = sshll.u32 %s1061_s13, 8 }
 0x10f   : > { %s426_s29 = ssub.s32 512, %s976_s20 }
 0x110   : > { %427 = vsyncadd %s413_s12, %s426_s29  ;;  %p549_p0 = scmp.ne.s32.totalorder %s976_s20, 0  ;;  %s559_s27 = sshll.u32 %s811_s19, 8 }
 0x111   : > { %s986_s7 = scalar_lea.hbm %s1042_s4, %s559_s27  ;;  %s551_s14 = sshll.u32 %s1061_s13, 3 }
 0x112   : > { %s433_s26 = sshll.u32 %s961_s10, 4  ;;  %s762_s22 = smov [#allocation7]   ;;  %s990_s26 = int_to_ptr.vmem [resolvable:$true] %s433_s26 }
 0x113   : > { %s685_s23 = scalar_lea.vmem %s990_s26, %s976_s20  ;;  %s689_s25 = sshll.u32 %s762_s22, 4  ;;  %s690_s25 = int_to_ptr.vmem [resolvable:$false] %s689_s25 }
 0x114   : > { %p686_p8 = scmp.ne.s32.totalorder %s990_s26, %s685_s23  ;;  %s691_s19 = scalar_lea.vmem %s690_s25, 1024 }
 0x115   : > { %p692_p1 = scmp.lt.s32.totalorder %s990_s26, %s690_s25  ;;  %p693_p11 = scmp.lt.s32.totalorder %s691_s19, %s685_s23 }
 0x116   : > { %p687_p9 = pnand %p686_p8, %p549_p0 }
 0x117   : > { %p694_p12 = por %p693_p11, %p692_p1 }
 0x118   : > { %p688_p10 = pneg %p687_p9 }
 0x11a   : > { %p695_p2 = pnand %p694_p12, %p688_p10 }
 0x11c   : > { %698 = shalt.err (!%p695_p2)
}
 0x11d   : > { %s699_s30 = scalar_lea.hbm %s986_s7, %s976_s20  ;;  %s703_s10 = scalar_lea.hbm %s1042_s4, 768 }
 0x11e   : > { %p700_p3 = scmp.ne.s32.totalorder %s986_s7, %s699_s30  ;;  %p704_p4 = scmp.lt.u32.totalorder %s986_s7, %s1042_s4 }
 0x11f   : > { %p705_p13 = scmp.lt.u32.totalorder %s703_s10, %s699_s30  ;;  %p707_p8 = scmp.lt.u32.totalorder %s699_s30, %s986_s7 }
 0x120   : > { %p701_p7 = pnand %p700_p3, %p549_p0 }
 0x121   : > { %p706_p5 = por %p705_p13, %p704_p4 }
 0x122   : > { %p702_p6 = pneg %p701_p7 }
 0x123   : > { %p708_p9 = por %p707_p8, %p706_p5 }
 0x125   : > { %p709_p10 = pnand %p708_p9, %p702_p6 }
 0x127   : > { %712 = shalt.err (!%p709_p10)
}
 0x128   : > { %s763_s5 = smov 256   ;;  %s764_s6 = smov 384  }
 0x129   : > { %439 = dma.vmem_to_hbm [thread:$0]  (%p549_p0), %s990_s26, %s976_s20, %s986_s7, %s413_s12, %s763_s5, %s764_s6, %s551_s14  }
 0x12a PF: > { %s448_s23 = sand.u32 1, %s743_s15   ;;  %p1052_p1 = scmp.ne.s32.totalorder %s1048_s28, 0 }
 0x12b   : > { %p1053_p11 = scmp.ge.s32.totalorder %s755_s18, 2  ;;  %s449_s22 = scalar_lea.sflag [#allocation4], %s448_s23 }
 0x12d   : > { %p573_p12 = pnand %p1053_p11, %p1052_p1 }
 0x12f   : > { %738 = dma.done.wait (!%p573_p12), %s449_s22, 512  }
 0x130   : > { %740 = vsyncadd (!%p573_p12), %s449_s22, 4294966784  ;;  %p18_p2 = scmp.ge.s32.totalorder %s815_s21, 4   ;;  %s1054_s15 = smov %s747_s16 }
 0x131   : > { %s1055_s16 = smov %s751_s17  ;;  %s1056_s17 = smov %s827_s24 }
 0x132   : > { %s1057_s18 = smov %s815_s21  ;;  %20 = sbr.rel (!%p18_p2) target bundleno = 6 (0x6), region = 89 }
 0x139   :  { %454 = vsyncpa [#allocation3], 1 }
 0x13a   :  { %456 = vsyncpa [#allocation3 + $0x1], 1 }
 0x13b   :  { %457 = vsyncpa [#allocation4], 1 }
 0x13c   :  { %459 = vsyncpa [#allocation4 + $0x1], 1 }
 0x13d   :  { %460 = vsyncpa [#allocation5], 1 }
 0x13e   :  { %462 = vsyncpa [#allocation5 + $0x1], 1 }

</bundles_post_ra>
